<compile_context>
chip_gen: v5e
topology: v5e:2x2
jax: 0.10.0
libtpu: 0.0.40
codegen_flags: <defaults>
</compile_context>

<pallas_src>
import functools

import jax
import jax.numpy as jnp
from jax.experimental import pallas as pl
from jax.experimental.pallas import tpu as pltpu


def _round_up(a, b):
    return ((a + b - 1) // b) * b


def _vmem_budget():
    """Return (vmem_limit_cap_bytes, max_row_tile) tuned per TPU generation."""
    try:
        phys = int(pltpu.get_tpu_info().vmem_capacity_bytes)
    except Exception:
        phys = 64 << 20                    # conservative default (v7x per-core)
    if phys <= (64 << 20):                 # v7x: 64 MiB/TC -> leave headroom
        return 48 << 20, 512
    return 96 << 20, 1024                  # v5e/v6e: 128 MiB, single TC


def _choose_row_tiling(m, pack, max_tile):
    """Pick (padded_rows, row_tile) with row_tile | padded_rows, minimal padding."""
    if m <= max_tile:
        if m >= 2 * pack and m % (2 * pack) == 0:
            return m, m // 2               # two equal steps, zero padding
        return m, m                        # one full-M block, zero padding
    m8 = _round_up(m, pack)
    best = None
    best_even = None
    t = pack
    while t <= max_tile:
        if m8 % t == 0:
            best = t
            if (m8 // t) % 2 == 0:
                best_even = t
        t += pack
    tile = best
    if best_even is not None and (best is None or best_even * 2 >= best):
        tile = best_even                   # prefer even step count (v7x cores)
    if tile is not None and tile * 4 >= max_tile:
        return m8, tile                    # exact tiling, <= pack-1 pad rows
    # Awkward factorisation: pad a little more to get large, even tiling.
    tile = max_tile
    return _round_up(m8, 2 * tile), tile


def _head_kernel(num_layers, apply_sigmoid, x_ref, cls_w_ref, cls_b_ref, *refs):
    """Fused cls Linear + reg MLP on one row tile.

    refs = (w0, b0, ..., w_{L-1}, b_{L-1}, logits_ref, boxes_ref)
    Weights are (in, out) (torch Linear.weight transposed); biases (1, out) f32.
    """
    logits_ref, boxes_ref = refs[-2], refs[-1]
    params = refs[:-2]
    x = x_ref[...]

    # --- classification head: Linear(hidden, 1) -----------------------------
    lhs = x if x.dtype == cls_w_ref.dtype else x.astype(cls_w_ref.dtype)
    logits = jnp.dot(lhs, cls_w_ref[...], preferred_element_type=jnp.float32)
    logits_ref[...] = (logits + cls_b_ref[...]).astype(logits_ref.dtype)

    # --- regression head: (Linear -> ReLU) x (L-1) -> Linear ----------------
    h = x
    for i in range(num_layers):
        w = params[2 * i]
        b = params[2 * i + 1]
        lhs = h if h.dtype == w.dtype else h.astype(w.dtype)
        h = jnp.dot(lhs, w[...], preferred_element_type=jnp.float32) + b[...]
        if i < num_layers - 1:
            h = jnp.maximum(h, 0.0)        # ReLU on all but the last layer
    if apply_sigmoid:
        h = 1.0 / (1.0 + jnp.exp(-h))      # sigmoid (anchor_offset=False path)
    boxes_ref[...] = h.astype(boxes_ref.dtype)


def transoar_heads_pallas(x, cls_w, cls_b, reg_weights, reg_biases,
                          *, apply_sigmoid=True, param_dtype=None):
    """pred_logits = x @ cls_w + cls_b ; pred_boxes = sigmoid(MLP(x)).

    x:           (..., hidden_dim)  (the neck output, any leading dims)
    cls_w:       (hidden_dim, 1)    (torch _cls_head.weight transposed)
    cls_b:       (1,)
    reg_weights: list of (in_i, out_i) (torch Linear.weight transposed)
    reg_biases:  list of (out_i,)
    param_dtype: optional low-precision weight storage (e.g. jnp.bfloat16);
                 matmuls still accumulate in f32.
    """
    num_layers = len(reg_weights)
    lead_shape = x.shape[:-1]
    hidden_dim = x.shape[-1]
    out_dim = reg_weights[-1].shape[1]
    assert cls_w.shape == (hidden_dim, 1)
    assert reg_weights[0].shape[0] == hidden_dim

    wdtype = param_dtype if param_dtype is not None else x.dtype
    cls_w_p = cls_w.astype(wdtype)
    cls_b_p = cls_b.astype(jnp.float32).reshape(1, 1)
    reg_w_p = [w.astype(wdtype) for w in reg_weights]
    reg_b_p = [b.astype(jnp.float32).reshape(1, -1) for b in reg_biases]

    # ---- rows: flatten leading dims, tile over rows only --------------------
    m = 1
    for d in lead_shape:
        m *= d
    x2d = x.reshape(m, hidden_dim)

    itemsize = x.dtype.itemsize
    pack = 8 * max(1, 4 // itemsize)       # sublane packing: 8 f32 / 16 bf16 / 32 i8
    vmem_cap, max_tile = _vmem_budget()
    m_pad, row_tile = _choose_row_tiling(m, pack, max_tile)
    if m_pad != m:
        # Only reached for large, awkwardly-sized M (pads < one row tile).
        x2d = jnp.pad(x2d, ((0, m_pad - m), (0, 0)))
    grid = (m_pad // row_tile,)

    # ---- VMEM budget: resident params + double-buffered I/O tiles ----------
    params = [cls_w_p, cls_b_p] + [a for wb in zip(reg_w_p, reg_b_p) for a in wb]
    param_bytes = sum(int(p.size) * p.dtype.itemsize for p in params)
    io_bytes = 2 * row_tile * (hidden_dim + 1 + out_dim) * itemsize
    acc_bytes = 2 * row_tile * max(hidden_dim, out_dim) * 4
    request = param_bytes + io_bytes + acc_bytes
    if request > vmem_cap:
        # TODO(synk): fall back to a K/N-tiled grid with a VMEM accumulator if
        # the parameter set ever outgrows resident VMEM (not the case for the
        # real TransoarNet head sizes, hidden_dim <= 384).
        raise ValueError(
            f"head parameters + tiles ({request} B) exceed the VMEM budget "
            f"({vmem_cap} B); K/N-tiled fallback not implemented")
    vmem_limit = int(min(max(4 * request, 4 << 20), vmem_cap))

    # x / outputs are row-tiled and pipelined; all params stay whole in VMEM.
    in_specs = [pl.BlockSpec((row_tile, hidden_dim), lambda i: (i, 0))]
    in_specs += [pl.BlockSpec(memory_space=pltpu.MemorySpace.VMEM)] * len(params)
    out_specs = [pl.BlockSpec((row_tile, 1), lambda i: (i, 0)),
                 pl.BlockSpec((row_tile, out_dim), lambda i: (i, 0))]
    out_shape = (jax.ShapeDtypeStruct((m_pad, 1), x.dtype),
                 jax.ShapeDtypeStruct((m_pad, out_dim), x.dtype))

    dims = [hidden_dim] + [w.shape[1] for w in reg_weights]
    flops = 2 * m * (hidden_dim * 1 + sum(a * b for a, b in zip(dims[:-1], dims[1:])))
    transcendentals = m * out_dim if apply_sigmoid else 0
    bytes_accessed = m * (hidden_dim + 1 + out_dim) * itemsize + param_bytes

    kernel = functools.partial(_head_kernel, num_layers, apply_sigmoid)
    logits2d, boxes2d = pl.pallas_call(
        kernel,
        out_shape=out_shape,
        grid_spec=pltpu.PrefetchScalarGridSpec(
            num_scalar_prefetch=0,
            grid=grid,
            in_specs=in_specs,
            out_specs=out_specs,
        ),
        compiler_params=pltpu.CompilerParams(
            dimension_semantics=("parallel",),
            vmem_limit_bytes=vmem_limit,
        ),
        cost_estimate=pl.CostEstimate(
            flops=flops, transcendentals=transcendentals,
            bytes_accessed=bytes_accessed),
    )(x2d, *params)

    if m_pad != m:
        logits2d = logits2d[:m]
        boxes2d = boxes2d[:m]
    return (logits2d.reshape(*lead_shape, 1),
            boxes2d.reshape(*lead_shape, out_dim))


def init_linear(key, n_in, n_out, dtype=jnp.float32):
    """torch.nn.Linear default init; weight stored as (in, out) == torch W.T."""
    kw, kb = jax.random.split(key)
    bound = 1.0 / (n_in ** 0.5)
    w = jax.random.uniform(kw, (n_in, n_out), dtype, -bound, bound)
    b = jax.random.uniform(kb, (n_out,), dtype, -bound, bound)
    return w, b


if __name__ == "__main__":
    # out_neck in the torch module is (num_decoder_layers, batch, num_queries,
    # hidden_dim); forward takes [-1].  Small, consistent shapes:
    dec_layers, batch, num_queries = 2, 2, 8
    hidden_dim, box_dim, num_mlp_layers = 32, 6, 3

    key = jax.random.PRNGKey(0)
    kx, kc, *kr = jax.random.split(key, 2 + num_mlp_layers)
    out_neck = jax.random.normal(
        kx, (dec_layers, batch, num_queries, hidden_dim), jnp.float32)

    cls_w, cls_b = init_linear(kc, hidden_dim, 1)
    dims_in = [hidden_dim, hidden_dim, hidden_dim]
    dims_out = [hidden_dim, hidden_dim, box_dim]
    reg_weights, reg_biases = [], []
    for k_i, n_in, n_out in zip(kr, dims_in, dims_out):
        w, b = init_linear(k_i, n_in, n_out)
        reg_weights.append(w)
        reg_biases.append(b)

    pred_logits, pred_boxes = transoar_heads_pallas(
        out_neck, cls_w, cls_b, reg_weights, reg_biases, apply_sigmoid=True)
    jax.block_until_ready((pred_logits, pred_boxes))

    # Pure-JAX reference (same math as the torch forward's head section).
    ref_logits = out_neck @ cls_w + cls_b
    h = out_neck
    for i, (w, b) in enumerate(zip(reg_weights, reg_biases)):
        h = h @ w + b
        if i < num_mlp_layers - 1:
            h = jnp.maximum(h, 0.0)
    ref_boxes = 1.0 / (1.0 + jnp.exp(-h))

    assert pred_logits.shape == (dec_layers, batch, num_queries, 1)
    assert pred_boxes.shape == (dec_layers, batch, num_queries, box_dim)
    assert jnp.allclose(pred_logits, ref_logits, atol=1e-5, rtol=1e-4)
    assert jnp.allclose(pred_boxes, ref_boxes, atol=1e-5, rtol=1e-4)

    # Mirror TransoarNet.forward's output dict (last decoder layer).
    out = {"pred_logits": pred_logits[-1],
           "pred_boxes": pred_boxes[-1],
           "pred_seg": 0}
    assert out["pred_logits"].shape == (batch, num_queries, 1)
    assert out["pred_boxes"].shape == (batch, num_queries, box_dim)

    print("KERNEL_OK")
</pallas_src>

<mosaic_0001>
module attributes {stable_mosaic.version = 11 : i64} {
  func.func @_head_kernel(%arg0: i32, %arg1: memref<16x32xf32, #tpu.memory_space<vmem>>, %arg2: memref<32x1xf32, #tpu.memory_space<vmem>>, %arg3: memref<1x1xf32, #tpu.memory_space<vmem>>, %arg4: memref<32x32xf32, #tpu.memory_space<vmem>>, %arg5: memref<1x32xf32, #tpu.memory_space<vmem>>, %arg6: memref<32x32xf32, #tpu.memory_space<vmem>>, %arg7: memref<1x32xf32, #tpu.memory_space<vmem>>, %arg8: memref<32x6xf32, #tpu.memory_space<vmem>>, %arg9: memref<1x6xf32, #tpu.memory_space<vmem>>, %arg10: memref<16x1xf32, #tpu.memory_space<vmem>>, %arg11: memref<16x6xf32, #tpu.memory_space<vmem>>) attributes {dimension_semantics = [#tpu.dimension_semantics<parallel>], iteration_bounds = array<i64: 2>, scalar_prefetch = 0 : i64, scratch_operands = 0 : i64, tpu.core_type = #tpu.core_type<tc>, window_params = [{transform_indices = @transform_0, window_bounds = array<i64: 16, 32>}, {pipeline_mode = #tpu.pipeline_mode<synchronous>, transform_indices = @transform_1, window_bounds = array<i64: 32, 1>}, {pipeline_mode = #tpu.pipeline_mode<synchronous>, transform_indices = @transform_2, window_bounds = array<i64: 1, 1>}, {pipeline_mode = #tpu.pipeline_mode<synchronous>, transform_indices = @transform_3, window_bounds = array<i64: 32, 32>}, {pipeline_mode = #tpu.pipeline_mode<synchronous>, transform_indices = @transform_4, window_bounds = array<i64: 1, 32>}, {pipeline_mode = #tpu.pipeline_mode<synchronous>, transform_indices = @transform_5, window_bounds = array<i64: 32, 32>}, {pipeline_mode = #tpu.pipeline_mode<synchronous>, transform_indices = @transform_6, window_bounds = array<i64: 1, 32>}, {pipeline_mode = #tpu.pipeline_mode<synchronous>, transform_indices = @transform_7, window_bounds = array<i64: 32, 6>}, {pipeline_mode = #tpu.pipeline_mode<synchronous>, transform_indices = @transform_8, window_bounds = array<i64: 1, 6>}, {transform_indices = @transform_9, window_bounds = array<i64: 16, 1>}, {transform_indices = @transform_10, window_bounds = array<i64: 16, 6>}]} {
    %c0 = arith.constant 0 : index
    %c0_0 = arith.constant 0 : index
    %0 = vector.load %arg1[%c0, %c0_0] : memref<16x32xf32, #tpu.memory_space<vmem>>, vector<16x32xf32>
    %c0_1 = arith.constant 0 : index
    %c0_2 = arith.constant 0 : index
    %1 = vector.load %arg2[%c0_1, %c0_2] : memref<32x1xf32, #tpu.memory_space<vmem>>, vector<32x1xf32>
    %cst = arith.constant dense<0.000000e+00> : vector<16x1xf32>
    %2 = tpu.matmul %0, %1, %cst {dimension_numbers = #tpu.dot_dimension_numbers<[1], [0], [0], [1], [0, 0, 1, 1], [], []>} : vector<16x32xf32>, vector<32x1xf32>, vector<16x1xf32> -> vector<16x1xf32>
    %c0_3 = arith.constant 0 : index
    %c0_4 = arith.constant 0 : index
    %3 = vector.load %arg3[%c0_3, %c0_4] : memref<1x1xf32, #tpu.memory_space<vmem>>, vector<1x1xf32>
    %4 = vector.broadcast %3 : vector<1x1xf32> to vector<16x1xf32>
    %5 = arith.addf %2, %4 : vector<16x1xf32>
    %c0_5 = arith.constant 0 : index
    %c0_6 = arith.constant 0 : index
    %6 = vector.load %arg10[%c0_5, %c0_6] : memref<16x1xf32, #tpu.memory_space<vmem>>, vector<16x1xf32>
    tpu.vector_store %arg10[%c0_5, %c0_6], %5 {strides = array<i32>} : memref<16x1xf32, #tpu.memory_space<vmem>>, vector<16x1xf32>,
    %c0_7 = arith.constant 0 : index
    %c0_8 = arith.constant 0 : index
    %7 = vector.load %arg4[%c0_7, %c0_8] : memref<32x32xf32, #tpu.memory_space<vmem>>, vector<32x32xf32>
    %cst_9 = arith.constant dense<0.000000e+00> : vector<16x32xf32>
    %8 = tpu.matmul %0, %7, %cst_9 {dimension_numbers = #tpu.dot_dimension_numbers<[1], [0], [0], [1], [0, 0, 1, 1], [], []>} : vector<16x32xf32>, vector<32x32xf32>, vector<16x32xf32> -> vector<16x32xf32>
    %c0_10 = arith.constant 0 : index
    %c0_11 = arith.constant 0 : index
    %9 = vector.load %arg5[%c0_10, %c0_11] : memref<1x32xf32, #tpu.memory_space<vmem>>, vector<1x32xf32>
    %10 = vector.broadcast %9 : vector<1x32xf32> to vector<16x32xf32>
    %11 = arith.addf %8, %10 : vector<16x32xf32>
    %cst_12 = arith.constant 0.000000e+00 : f32
    %12 = vector.broadcast %cst_12 : f32 to vector<16x32xf32>
    %13 = arith.maximumf %11, %12 : vector<16x32xf32>
    %c0_13 = arith.constant 0 : index
    %c0_14 = arith.constant 0 : index
    %14 = vector.load %arg6[%c0_13, %c0_14] : memref<32x32xf32, #tpu.memory_space<vmem>>, vector<32x32xf32>
    %cst_15 = arith.constant dense<0.000000e+00> : vector<16x32xf32>
    %15 = tpu.matmul %13, %14, %cst_15 {dimension_numbers = #tpu.dot_dimension_numbers<[1], [0], [0], [1], [0, 0, 1, 1], [], []>} : vector<16x32xf32>, vector<32x32xf32>, vector<16x32xf32> -> vector<16x32xf32>
    %c0_16 = arith.constant 0 : index
    %c0_17 = arith.constant 0 : index
    %16 = vector.load %arg7[%c0_16, %c0_17] : memref<1x32xf32, #tpu.memory_space<vmem>>, vector<1x32xf32>
    %17 = vector.broadcast %16 : vector<1x32xf32> to vector<16x32xf32>
    %18 = arith.addf %15, %17 : vector<16x32xf32>
    %cst_18 = arith.constant 0.000000e+00 : f32
    %19 = vector.broadcast %cst_18 : f32 to vector<16x32xf32>
    %20 = arith.maximumf %18, %19 : vector<16x32xf32>
    %c0_19 = arith.constant 0 : index
    %c0_20 = arith.constant 0 : index
    %21 = vector.load %arg8[%c0_19, %c0_20] : memref<32x6xf32, #tpu.memory_space<vmem>>, vector<32x6xf32>
    %cst_21 = arith.constant dense<0.000000e+00> : vector<16x6xf32>
    %22 = tpu.matmul %20, %21, %cst_21 {dimension_numbers = #tpu.dot_dimension_numbers<[1], [0], [0], [1], [0, 0, 1, 1], [], []>} : vector<16x32xf32>, vector<32x6xf32>, vector<16x6xf32> -> vector<16x6xf32>
    %c0_22 = arith.constant 0 : index
    %c0_23 = arith.constant 0 : index
    %23 = vector.load %arg9[%c0_22, %c0_23] : memref<1x6xf32, #tpu.memory_space<vmem>>, vector<1x6xf32>
    %24 = vector.broadcast %23 : vector<1x6xf32> to vector<16x6xf32>
    %25 = arith.addf %22, %24 : vector<16x6xf32>
    %cst_24 = arith.constant 0.000000e+00 : f32
    %26 = vector.broadcast %cst_24 : f32 to vector<16x6xf32>
    %27 = arith.subf %26, %25 : vector<16x6xf32>
    %28 = math.exp %27 : vector<16x6xf32>
    %cst_25 = arith.constant 1.000000e+00 : f32
    %29 = vector.broadcast %cst_25 : f32 to vector<16x6xf32>
    %30 = arith.addf %29, %28 : vector<16x6xf32>
    %cst_26 = arith.constant 1.000000e+00 : f32
    %31 = vector.broadcast %cst_26 : f32 to vector<16x6xf32>
    %32 = arith.divf %31, %30 : vector<16x6xf32>
    %c0_27 = arith.constant 0 : index
    %c0_28 = arith.constant 0 : index
    %33 = vector.load %arg11[%c0_27, %c0_28] : memref<16x6xf32, #tpu.memory_space<vmem>>, vector<16x6xf32>
    tpu.vector_store %arg11[%c0_27, %c0_28], %32 {strides = array<i32>} : memref<16x6xf32, #tpu.memory_space<vmem>>, vector<16x6xf32>,
    return
  }
  func.func @transform_0(%arg0: i32) -> (i32, i32) {
    %c0_i32 = arith.constant 0 : i32
    %c0_i32_0 = arith.constant 0 : i32
    return %arg0, %c0_i32 : i32, i32
  }
  func.func @transform_1(%arg0: i32) -> (i32, i32) {
    %c0_i32 = arith.constant 0 : i32
    %c0_i32_0 = arith.constant 0 : i32
    %c0_i32_1 = arith.constant 0 : i32
    return %c0_i32, %c0_i32_0 : i32, i32
  }
  func.func @transform_2(%arg0: i32) -> (i32, i32) {
    %c0_i32 = arith.constant 0 : i32
    %c0_i32_0 = arith.constant 0 : i32
    %c0_i32_1 = arith.constant 0 : i32
    return %c0_i32, %c0_i32_0 : i32, i32
  }
  func.func @transform_3(%arg0: i32) -> (i32, i32) {
    %c0_i32 = arith.constant 0 : i32
    %c0_i32_0 = arith.constant 0 : i32
    %c0_i32_1 = arith.constant 0 : i32
    return %c0_i32, %c0_i32_0 : i32, i32
  }
  func.func @transform_4(%arg0: i32) -> (i32, i32) {
    %c0_i32 = arith.constant 0 : i32
    %c0_i32_0 = arith.constant 0 : i32
    %c0_i32_1 = arith.constant 0 : i32
    return %c0_i32, %c0_i32_0 : i32, i32
  }
  func.func @transform_5(%arg0: i32) -> (i32, i32) {
    %c0_i32 = arith.constant 0 : i32
    %c0_i32_0 = arith.constant 0 : i32
    %c0_i32_1 = arith.constant 0 : i32
    return %c0_i32, %c0_i32_0 : i32, i32
  }
  func.func @transform_6(%arg0: i32) -> (i32, i32) {
    %c0_i32 = arith.constant 0 : i32
    %c0_i32_0 = arith.constant 0 : i32
    %c0_i32_1 = arith.constant 0 : i32
    return %c0_i32, %c0_i32_0 : i32, i32
  }
  func.func @transform_7(%arg0: i32) -> (i32, i32) {
    %c0_i32 = arith.constant 0 : i32
    %c0_i32_0 = arith.constant 0 : i32
    %c0_i32_1 = arith.constant 0 : i32
    return %c0_i32, %c0_i32_0 : i32, i32
  }
  func.func @transform_8(%arg0: i32) -> (i32, i32) {
    %c0_i32 = arith.constant 0 : i32
    %c0_i32_0 = arith.constant 0 : i32
    %c0_i32_1 = arith.constant 0 : i32
    return %c0_i32, %c0_i32_0 : i32, i32
  }
  func.func @transform_9(%arg0: i32) -> (i32, i32) {
    %c0_i32 = arith.constant 0 : i32
    %c0_i32_0 = arith.constant 0 : i32
    return %arg0, %c0_i32 : i32, i32
  }
  func.func @transform_10(%arg0: i32) -> (i32, i32) {
    %c0_i32 = arith.constant 0 : i32
    %c0_i32_0 = arith.constant 0 : i32
    return %arg0, %c0_i32 : i32, i32
  }
}

</mosaic_0001>

<bundles_post_ra>
// kernel: tpu_custom_call.1
= control target key start
LH: loop header
LB: loop body
LE: loop exit
PB: predicated region body
PF: predicated region fallthrough
CT: control target
= control target key end

     0   :  { %s933_s0 = inlined_call_operand.vmem [shape: f32[32,32], index: 0, kind: input, shape index: {}]   ;;  %s934_s1 = inlined_call_operand.vmem [shape: f32[32,1], index: 1, kind: input, shape index: {}]   ;;  %s935_s2 = inlined_call_operand.<no memory space> [shape: f32[1,1], index: 2, kind: input, shape index: {}]   ;;  %s936_s3 = inlined_call_operand.vmem [shape: f32[32,32], index: 3, kind: input, shape index: {}]   ;;  %s937_s4 = inlined_call_operand.vmem [shape: f32[1,32], index: 4, kind: input, shape index: {}]   ;;  %s938_s5 = inlined_call_operand.hbm [shape: f32[32,32], index: 5, kind: input, shape index: {}]   ;;  %s939_s6 = inlined_call_operand.vmem [shape: f32[1,32], index: 6, kind: input, shape index: {}]   ;;  %s940_s7 = inlined_call_operand.vmem [shape: f32[32,6], index: 7, kind: input, shape index: {}]   ;;  %s941_s8 = inlined_call_operand.vmem [shape: f32[1,6], index: 8, kind: input, shape index: {}]   ;;  %s942_s9 = inlined_call_operand.vmem [shape: f32[32,1], index: 9, kind: output, shape index: {0}]   ;;  %s943_s10 = inlined_call_operand.vmem [shape: f32[32,6], index: 10, kind: output, shape index: {1}]  }
   0x1   :  { %v16_v0 = vstv %s935_s2 }
   0x2   :  { %17 = vst [vmem:[#allocation2] sm:$0x1] %v16_v0 }
   0x3   :  { %18 = vsyncpa [#allocation4], 0  ;;  %s850_s15 = smov 0  }
   0x4 LB: > { %s298_s18 = sshll.u32 %s938_s5, 4  ;;  %s691_s19 = sadd.s32 4294967295, %s787_s15   ;;  %s787_s15 = sphi %s850_s15, %s24_s15   ;;  %s299_s18 = int_to_ptr.hbm [resolvable:$true] %s298_s18 }
   0x5   : > { %p693_p0 = scmp.ge.s32.totalorder %s787_s15, 1  ;;  %p275_p1 = scmp.lt.s32.totalorder %s787_s15, 3 }
   0x6   : > { %p722_p2 = scmp.eq.s32.totalorder %s691_s19, 0  ;;  %s789_s2 = smov [#allocation3]  }
   0x7   : > { %p276_p3 = pnand %p693_p0, %p275_p1  ;;  %s300_s20 = sshll.u32 %s789_s2, 4  ;;  %s301_s20 = int_to_ptr.vmem [resolvable:$true] %s300_s20 }
   0x8   : > { %s790_s21 = smov 128   ;;  %s791_s22 = smov 8  }
   0x9   : > { %p718_p4 = pneg %p276_p3  ;;  %334 = sbr.rel (%p276_p3) target bundleno = 462 (0x1ce), region = 56 }
   0xb   : > { %p719_p5 = pnand %p722_p2, %p718_p4 }
   0xd   : > { %721 = dma.hbm_to_vmem [thread:$0]  (!%p719_p5), %s299_s18, 512, %s301_s20, [#allocation4], %s790_s21, %s790_s21, %s791_s22  }
   0xe   : > { %782 = dma.done.wait (%p722_p2), [#allocation4], 512  }
   0xf   : > { %784 = vsyncadd (%p722_p2), [#allocation4], 4294966784  ;;  %s698_s23 = sshll.u32 %s691_s19, 1  ;;  %v442_v1 = vld [vmem:[%s936_s3 + $0x18] sm:$0xff]  ;;  %v441_v2 = vld [vmem:[%s936_s3 + $0x10] sm:$0xff]  ;;  %vm406_vm0 = vcmask 261120  }
  0x10   : > { %p379_p6 = scmp.lt.s32.totalorder %s698_s23, 3  ;;  %459 = vmatpush.msra.mxu1 %v442_v1  ;;  %v440_v3 = vld [vmem:[%s936_s3 + $0x8] sm:$0xff]  ;;  %v475_v4 = vld [vmem:[#allocation3 + $0x18] sm:$0xff]  ;;  %v474_v8 = vld [vmem:[#allocation3 + $0x10] sm:$0xff]  ;;  %vm436_vm1 = vcmask 7168   ;;  %vm586_vm5 = vcmask 48128  }
  0x11   : > { %498 = vmatpush.msra.mxu2 %v475_v4  ;;  %v439_v5 = vld [vmem:[%s936_s3] sm:$0xff]  ;;  %v473_v9 = vld [vmem:[#allocation3 + $0x8] sm:$0xff]  ;;  %v514_v11 = vld [vmem:[%s940_s7 + $0x18] sm:$0xff] }
  0x12   : > { %s945_s23 = smov (!%p379_p6, %s698_s23), 3  ;;  %460 = vmatpush.msra.mxu1 %v441_v2  ;;  %v472_v10 = vld [vmem:[#allocation3] sm:$0xff]  ;;  %537 = vmatpush.msra.mxu3 %v514_v11  ;;  %v735_v12 = vld [vmem:[%s937_s4] ss:$0 sm:$0xff]  ;;  %v513_v19 = vld [vmem:[%s940_s7 + $0x10] sm:$0xff] }
  0x13   : > { %s861_s24 = sshll.u32 %s945_s23, 3  ;;  %499 = vmatpush.msra.mxu2 %v474_v8  ;;  %v512_v20 = vld [vmem:[%s940_s7 + $0x8] sm:$0xff]  ;;  %v511_v21 = vld [vmem:[%s940_s7] sm:$0xff]  ;;  %v401_v22 = vld [vmem:[%s934_s1 + $0x18] sm:$0xff] }
  0x14   : > { %s382_s13 = scalar_lea.vmem %s933_s0, %s861_s24  ;;  %461 = vmatpush.msra.mxu1 %v440_v3  ;;  %538 = vmatpush.msra.mxu3 %v513_v19  ;;  %v400_v23 = vld [vmem:[%s934_s1 + $0x10] sm:$0xff]  ;;  %v399_v24 = vld [vmem:[%s934_s1 + $0x8] sm:$0xff]  ;;  %v398_v25 = vld [vmem:[%s934_s1] sm:$0xff]  ;;  %s388_s21 = scalar_lea.vmem %s942_s9, %s861_s24 }
  0x15   : > { %v396_v6 = vld [vmem:[%s382_s13] sm:$0xff]  ;;  %v397_v7 = vld [vmem:[%s382_s13 + $0x8] sm:$0xff]  ;;  %500 = vmatpush.msra.mxu2 %v473_v9  ;;  %425 = vmatpush.msra.mxu0 %v401_v22  ;;  %s394_s25 = scalar_lea.vmem %s943_s10, %s861_s24 }
  0x16   : > { %462 = vmatpush.msra.mxu1 %v439_v5  ;;  %539 = vmatpush.msra.mxu3 %v512_v20  ;;  %v736_v26 = vld [vmem:[%s939_s6] ss:$0 sm:$0xff] }
  0x17   : > { %706 = vmatmul.msk.f32.vlgmr.msra.gmra.mxu1 %vm406_vm0, %v396_v6  ;;  %501 = vmatpush.msra.mxu2 %v472_v10  ;;  %v737_v33 = vld [vmem:[%s941_s8] ss:$0 sm:$0xff] }
  0x18   : > { %540 = vmatpush.msra.mxu3 %v511_v21  ;;  %426 = vmatpush.msra.mxu0 %v400_v23  ;;  %v738_v34 = vld [vmem:[#allocation2] ss:$0 sm:$0xff] }
  0x1a   : > { %427 = vmatpush.msra.mxu0 %v399_v24 }
  0x1c   : > { %428 = vmatpush.msra.mxu0 %v398_v25 }
  0x1d   : > { %704 = vmatmul.msk.f32.vlgmr.msra.gmra.mxu0 %vm406_vm0, %v396_v6 }
  0x1f   : > { %707 = vmatmul.msk.f32.gmra.mxu1 %vm406_vm0, %v397_v7 }
  0x25   : > { %705 = vmatmul.msk.f32.gmra.mxu0 %vm406_vm0, %v397_v7 }
  0x94   : > { %v464_v13 = vpop.f32.mrf.mxu1 }
  0x95   : > { %v465_v14 = vadd.f32 %v735_v12, %v464_v13 }
  0x97   : > { %v470_v15 = vmax.f32 %v465_v14, 0.0 }
  0x99   : > { %708 = vmatmul.msk.f32.vlgmr.msra.gmra.mxu2 %vm406_vm0, %v470_v15 }
  0x9a   : > { %v430_v35 = vpop.f32.mrf.mxu0 }
  0x9b   : > { %v431_v36 = vadd.f32 %v738_v34, %v430_v35 }
  0x9c   : > { %v467_v16 = vpop.f32.mrf.mxu1 }
  0x9d   : > { %v468_v17 = vadd.f32 %v735_v12, %v467_v16  ;;  %437 = vst.msk [vmem:[%s388_s21] sm:$0xff] %vm436_vm1, %v431_v36 }
  0x9f   : > { %v471_v18 = vmax.f32 %v468_v17, 0.0 }
  0xa1   : > { %709 = vmatmul.msk.f32.gmra.mxu2 %vm406_vm0, %v471_v18 }
  0xa2   : > { %v433_v41 = vpop.f32.mrf.mxu0 }
  0xa3   : > { %v434_v42 = vadd.f32 %v738_v34, %v433_v41 }
  0xa5   : > { %438 = vst.msk [vmem:[%s388_s21 + $0x8] sm:$0xff] %vm436_vm1, %v434_v42 }
 0x11c   : > { %v503_v27 = vpop.f32.mrf.mxu2 }
 0x11d   : > { %v504_v28 = vadd.f32 %v736_v26, %v503_v27 }
 0x11f   : > { %v509_v29 = vmax.f32 %v504_v28, 0.0 }
 0x121   : > { %710 = vmatmul.msk.f32.vlgmr.msra.gmra.mxu3 %vm406_vm0, %v509_v29 }
 0x124   : > { %v506_v30 = vpop.f32.mrf.mxu2 }
 0x125   : > { %v507_v31 = vadd.f32 %v736_v26, %v506_v30 }
 0x127   : > { %v510_v32 = vmax.f32 %v507_v31, 0.0 }
 0x129   : > { %711 = vmatmul.msk.f32.gmra.mxu3 %vm406_vm0, %v510_v32 }
 0x1a4   : > { %v542_v37 = vpop.f32.mrf.mxu3 }
 0x1a5   : > { %v543_v38 = vadd.f32 %v737_v33, %v542_v37 }
 0x1a7   : > { %v548_v39 = vsub.f32 0.0, %v543_v38 }
 0x1a9   : > { %v550_v40 = vmul.f32 1.442695, %v548_v39 }
 0x1ab   : > { %739 = vpow2.f32 %v550_v40 }
 0x1ac   : > { %v545_v43 = vpop.f32.mrf.mxu3 }
 0x1ad   : > { %v546_v44 = vadd.f32 %v737_v33, %v545_v43 }
 0x1af   : > { %v549_v45 = vsub.f32 0.0, %v546_v44 }
 0x1b1   : > { %v740_v46 = vpop.eup %739  ;;  %v552_v47 = vmul.f32 1.442695, %v549_v45 }
 0x1b2   : > { %v554_v48 = vadd.f32 1.0, %v740_v46 }
 0x1b3   : > { %741 = vpow2.f32 %v552_v47 }
 0x1b4   : > { %743 = vrcp.f32 %v554_v48  ;;  %v567_v54 = vand.u32 2147483648, %v554_v48  ;;  %v565_v56 = vand.u32 2147483647, %v554_v48  ;;  %vm561_vm3 = vweird.f32 %v554_v48 }
 0x1b6   : > { %v568_v59 = vor.u32 1.1754944e-38, %v567_v54  ;;  %vm566_vm6 = vcmp.eq.f32.partialorder %v565_v56, 8.507059e+37 }
 0x1b9   : > { %v742_v49 = vpop.eup %741 }
 0x1ba   : > { %v744_v50 = vpop.eup %743  ;;  %v555_v51 = vadd.f32 1.0, %v742_v49 }
 0x1bb   : > { %v557_v52 = vmul.f32 %v744_v50, %v554_v48  ;;  %vm562_vm2 = vweird.f32 %v744_v50 }
 0x1bc   : > { %745 = vrcp.f32 %v555_v51  ;;  %vm563_vm4 = vmor %vm561_vm3, %vm562_vm2  ;;  %v582_v0 = vand.u32 2147483648, %v555_v51  ;;  %v580_v2 = vand.u32 2147483647, %v555_v51  ;;  %vm576_vm8 = vweird.f32 %v555_v51 }
 0x1bd   : > { %v558_v53 = vsub.f32 1.0, %v557_v52 }
 0x1be   : > { %v583_v4 = vor.u32 1.1754944e-38, %v582_v0  ;;  %vm581_vm10 = vcmp.eq.f32.partialorder %v580_v2, 8.507059e+37 }
 0x1bf   : > { %v559_v55 = vmul.f32 %v744_v50, %v558_v53 }
 0x1c1   : > { %v560_v57 = vadd.f32 %v744_v50, %v559_v55 }
 0x1c2   : > { %v746_v58 = vpop.eup %745 }
 0x1c3   : > { %v564_v60 = vsel %vm563_vm4, %v744_v50, %v560_v57  ;;  %v572_v61 = vmul.f32 %v746_v58, %v555_v51  ;;  %vm577_vm7 = vweird.f32 %v746_v58 }
 0x1c4   : > { %v569_v62 = vsel %vm566_vm6, %v568_v59, %v564_v60  ;;  %vm578_vm9 = vmor %vm576_vm8, %vm577_vm7 }
 0x1c5   : > { %587 = vst.msk [vmem:[%s394_s25] sm:$0xff] %vm586_vm5, %v569_v62  ;;  %v573_v63 = vsub.f32 1.0, %v572_v61 }
 0x1c7   : > { %v574_v1 = vmul.f32 %v746_v58, %v573_v63 }
 0x1c9   : > { %v575_v3 = vadd.f32 %v746_v58, %v574_v1 }
 0x1cb   : > { %v579_v5 = vsel %vm578_vm9, %v746_v58, %v575_v3 }
 0x1cc   : > { %v584_v6 = vsel %vm581_vm10, %v583_v4, %v579_v5 }
 0x1cd   : > { %588 = vst.msk [vmem:[%s394_s25 + $0x8] sm:$0xff] %vm586_vm5, %v584_v6 }
 0x1ce PF: > { %s24_s15 = sadd.s32 1, %s787_s15  }
 0x1cf   : > { %p21_p7 = scmp.ge.s32.totalorder %s24_s15, 4  }
 0x1d1   :  { %23 = sbr.rel (!%p21_p7) target bundleno = 4 (0x4), region = 103 }
 0x1d6   :  { %628 = vsyncpa [#allocation4], 1 }
 0x1d7   :  { %630 = vsyncpa [#allocation4 + $0x1], 1 }

</bundles_post_ra>
